<compile_context>
chip_gen: v6e
topology: v6e:2x2x1
jax: 0.10.0
libtpu: 0.0.40
codegen_flags: <defaults>
</compile_context>

<pallas_src>
import jax
import jax.numpy as jnp
from jax.experimental import pallas as pl
from jax.experimental.pallas import tpu as pltpu


def _quant_kernel(p_ref, x_ref, o_ref):
    # p_ref: (RB, 4) f32 per-row params packed as [inv_alpha, alpha, qn, qp].
    # x_ref / o_ref: (RB, TL) tile of the feature map.
    inv_alpha = p_ref[:, 0:1]                             # (RB, 1)
    alpha = p_ref[:, 1:2]                                 # (RB, 1)
    qn = p_ref[:, 2:3]                                    # (RB, 1)
    qp = p_ref[:, 3:4]                                    # (RB, 1)
    x = x_ref[...].astype(jnp.float32)                    # (RB, TL)
    q = jnp.clip(jnp.round(x * inv_alpha), qn, qp)        # quantize + clamp
    o_ref[...] = (q * alpha).astype(o_ref.dtype)


def _row_align(dtype):
    """Sublane-packing alignment: 8 rows (f32), 16 (bf16), 32 (int8/fp8)."""
    return max(8, 32 // jnp.dtype(dtype).itemsize)


def _choose_block(extent, target, align):
    """Largest legal block <= target: either full extent or an `align` multiple."""
    if extent <= target:
        return extent                      # full-extent block is always legal
    return max(align, (target // align) * align)


def feature_weight_quantization_v2(fea_nchw, alpha, bit,
                                   *, row_target=256, lane_target=4096):
    """fea_nchw: (N, C, H, W); alpha, bit: (C, 1). Returns (N, C, H, W)."""
    N, C, H, W = fea_nchw.shape
    assert alpha.shape == (C, 1) and bit.shape == (C, 1)
    R, L = N * C, H * W

    # Zero-copy view: NCHW (contiguous) -> (N*C, H*W); row r is channel r % C.
    x_rl = fea_nchw.reshape(R, L)
    # TODO(synk): when L = H*W is not a multiple of 128 (e.g. 7*7, 14*14) the
    # tail lane block uses masked stores; a lane-dense repack would trade an
    # extra HBM pass for unmasked stores (not done here — correctness is kept).

    # Tiny per-row parameter prep in the wrapper (N*C*4 floats total).
    alpha_f32 = alpha.astype(jnp.float32)
    inv_alpha = 1.0 / alpha_f32
    b = jnp.round(bit.astype(jnp.float32))
    qp = jnp.exp2(b - 1.0) - 1.0
    qn = -jnp.exp2(b - 1.0)
    params_c = jnp.concatenate([inv_alpha, alpha_f32, qn, qp], axis=1)   # (C, 4)
    params = jnp.tile(params_c, (N, 1))                                  # (R, 4)

    # Tile selection: full extent or aligned blocks (dtype-aware on rows).
    row_align = _row_align(fea_nchw.dtype)
    row_block = _choose_block(R, row_target, row_align)
    tile_l = _choose_block(L, lane_target, 128)

    # v7x megacore: keep >= 2 grid blocks when there's enough data; round the
    # row split to the dtype sublane multiple.
    if pl.cdiv(R, row_block) * pl.cdiv(L, tile_l) == 1:
        if R >= 2 * row_align:
            half = pl.cdiv(R, 2)
            row_block = ((half + row_align - 1) // row_align) * row_align
        elif L >= 256:
            tile_l = 128 * pl.cdiv(pl.cdiv(L, 128), 2)

    grid = (pl.cdiv(R, row_block), pl.cdiv(L, tile_l))

    itemsize = jnp.dtype(fea_nchw.dtype).itemsize
    cost = pl.CostEstimate(
        flops=5 * R * L,                                   # mul, round, 2x clip, mul
        transcendentals=0,
        bytes_accessed=2 * R * L * itemsize + params.size * 4,
    )

    out_rl = pl.pallas_call(
        _quant_kernel,
        out_shape=jax.ShapeDtypeStruct((R, L), fea_nchw.dtype),
        grid_spec=pltpu.PrefetchScalarGridSpec(
            num_scalar_prefetch=0,
            grid=grid,
            in_specs=[
                pl.BlockSpec((row_block, 4), lambda i, j: (i, 0)),        # packed params
                pl.BlockSpec((row_block, tile_l), lambda i, j: (i, j)),   # fea
            ],
            out_specs=pl.BlockSpec((row_block, tile_l), lambda i, j: (i, j)),
        ),
        compiler_params=pltpu.CompilerParams(
            dimension_semantics=("parallel", "parallel"),
            vmem_limit_bytes=32 * 1024 * 1024,
        ),
        cost_estimate=cost,
    )(params, x_rl)

    # Zero-copy view back to NCHW.
    return out_rl.reshape(N, C, H, W)


def make_params(out_channels, bit, alpha_init=0.01, alpha_std=0.01, seed=0):
    """Deterministic replication of the module's __init__."""
    key = jax.random.PRNGKey(seed)
    alpha = jnp.abs(
        alpha_init + alpha_std * jax.random.normal(key, (out_channels, 1), jnp.float32)
    )
    bit_param = jnp.full((out_channels, 1), float(bit), jnp.float32)
    return alpha, bit_param


def _reference(fea, alpha, bit):
    """Pure-JAX reference of the same forward (same inv_alpha formulation as
    the kernel so the check is exact; see note on 1-ulp vs. a true divide)."""
    a = alpha.astype(jnp.float32)[None, :, :, None]       # (1, C, 1, 1)
    inv_a = 1.0 / a
    b = jnp.round(bit.astype(jnp.float32))[None, :, :, None]
    qp = jnp.exp2(b - 1.0) - 1.0
    qn = -jnp.exp2(b - 1.0)
    q = jnp.clip(jnp.round(fea.astype(jnp.float32) * inv_a), qn, qp)
    return (q * a).astype(fea.dtype)


if __name__ == "__main__":
    key = jax.random.PRNGKey(0)
    N, C, H, W = 2, 4, 16, 16            # small NCHW feature map, C = out_channels
    BIT = 4

    k_x, _ = jax.random.split(key)
    fea = 0.05 * jax.random.normal(k_x, (N, C, H, W), jnp.float32)
    alpha, bit_param = make_params(C, BIT, seed=0)

    out = feature_weight_quantization_v2(fea, alpha, bit_param)
    out = jax.block_until_ready(out)

    ref = _reference(fea, alpha, bit_param)
    assert out.shape == fea.shape and out.dtype == fea.dtype
    assert jnp.max(jnp.abs(out - ref)) < 1e-5, "mismatch vs reference"

    print("KERNEL_OK")
</pallas_src>

<mosaic_0001>
module attributes {stable_mosaic.version = 11 : i64} {
  func.func @_quant_kernel(%arg0: i32, %arg1: i32, %arg2: memref<8x4xf32, #tpu.memory_space<vmem>>, %arg3: memref<8x128xf32, #tpu.memory_space<vmem>>, %arg4: memref<8x128xf32, #tpu.memory_space<vmem>>) attributes {dimension_semantics = [#tpu.dimension_semantics<parallel>, #tpu.dimension_semantics<parallel>], iteration_bounds = array<i64: 1, 2>, scalar_prefetch = 0 : i64, scratch_operands = 0 : i64, tpu.core_type = #tpu.core_type<tc>, window_params = [{transform_indices = @transform_0, window_bounds = array<i64: 8, 4>}, {transform_indices = @transform_1, window_bounds = array<i64: 8, 128>}, {transform_indices = @transform_2, window_bounds = array<i64: 8, 128>}]} {
    %c0 = arith.constant 0 : index
    %c0_0 = arith.constant 0 : index
    %0 = vector.load %arg2[%c0, %c0_0] : memref<8x4xf32, #tpu.memory_space<vmem>>, vector<8x1xf32>
    %c0_1 = arith.constant 0 : index
    %c1 = arith.constant 1 : index
    %1 = vector.load %arg2[%c0_1, %c1] : memref<8x4xf32, #tpu.memory_space<vmem>>, vector<8x1xf32>
    %c0_2 = arith.constant 0 : index
    %c2 = arith.constant 2 : index
    %2 = vector.load %arg2[%c0_2, %c2] : memref<8x4xf32, #tpu.memory_space<vmem>>, vector<8x1xf32>
    %c0_3 = arith.constant 0 : index
    %c3 = arith.constant 3 : index
    %3 = vector.load %arg2[%c0_3, %c3] : memref<8x4xf32, #tpu.memory_space<vmem>>, vector<8x1xf32>
    %c0_4 = arith.constant 0 : index
    %c0_5 = arith.constant 0 : index
    %4 = vector.load %arg3[%c0_4, %c0_5] : memref<8x128xf32, #tpu.memory_space<vmem>>, vector<8x128xf32>
    %5 = vector.broadcast %0 : vector<8x1xf32> to vector<8x128xf32>
    %6 = arith.mulf %4, %5 : vector<8x128xf32>
    %7 = math.roundeven %6 : vector<8x128xf32>
    %8 = vector.broadcast %2 : vector<8x1xf32> to vector<8x128xf32>
    %9 = arith.maximumf %8, %7 : vector<8x128xf32>
    %10 = vector.broadcast %3 : vector<8x1xf32> to vector<8x128xf32>
    %11 = arith.minimumf %10, %9 : vector<8x128xf32>
    %12 = vector.broadcast %1 : vector<8x1xf32> to vector<8x128xf32>
    %13 = arith.mulf %11, %12 : vector<8x128xf32>
    %c0_6 = arith.constant 0 : index
    %c0_7 = arith.constant 0 : index
    %14 = vector.load %arg4[%c0_6, %c0_7] : memref<8x128xf32, #tpu.memory_space<vmem>>, vector<8x128xf32>
    tpu.vector_store %arg4[%c0_6, %c0_7], %13 {strides = array<i32>} : memref<8x128xf32, #tpu.memory_space<vmem>>, vector<8x128xf32>,
    return
  }
  func.func @transform_0(%arg0: i32, %arg1: i32) -> (i32, i32) {
    %c0_i32 = arith.constant 0 : i32
    %c0_i32_0 = arith.constant 0 : i32
    return %arg0, %c0_i32 : i32, i32
  }
  func.func @transform_1(%arg0: i32, %arg1: i32) -> (i32, i32) {
    %c0_i32 = arith.constant 0 : i32
    return %arg0, %arg1 : i32, i32
  }
  func.func @transform_2(%arg0: i32, %arg1: i32) -> (i32, i32) {
    %c0_i32 = arith.constant 0 : i32
    return %arg0, %arg1 : i32, i32
  }
}

</mosaic_0001>

<bundles_post_ra>
// kernel: tpu_custom_call.1
= control target key start
LH: loop header
LB: loop body
LE: loop exit
PB: predicated region body
PF: predicated region fallthrough
CT: control target
= control target key end

     0   :  { %7 = vsyncpa [#allocation3], 0  ;;  %s697_s0 = inlined_call_operand.vmem [shape: f32[8,4], index: 0, kind: input, shape index: {}]   ;;  %s698_s1 = inlined_call_operand.hbm [shape: f32[8,256], index: 1, kind: input, shape index: {}]   ;;  %s699_s2 = inlined_call_operand.hbm [shape: f32[8,256], index: 2, kind: output, shape index: {}]  }
   0x1   :  { %9 = vsyncpa [#allocation3 + $0x1], 0 }
   0x2   :  { %10 = vsyncpa [#allocation4], 0 }
   0x3   :  { %12 = vsyncpa [#allocation4 + $0x1], 0  ;;  %s556_s9 = smov 0   ;;  %s558_s10 = smov 0  }
   0x4   :  { %s560_s11 = smov 0   ;;  %s562_s12 = smov 0  }
   0x5   :  { %s564_s13 = smov 0   ;;  %s566_s14 = smov 0  }
   0x6 LB: > { %s332_s15 = sadd.s32 4294967295, %s533_s14   ;;  %s333_s16 = sadd.s32 4294967294, %s533_s14   ;;  %s533_s14 = sphi %s566_s14, %s18_s14   ;;  %s529_s13 = sphi %s564_s13, %s711_s13   ;;  %s525_s12 = sphi %s562_s12, %s710_s12   ;;  %s521_s11 = sphi %s560_s11, %s709_s11   ;;  %s517_s10 = sphi %s558_s10, %s708_s10   ;;  %s513_s9 = sphi %s556_s9, %s707_s9  }
   0x7   : > { %s27_s17 = sadd.s32 1, %s529_s13  ;;  %s65_s18 = sadd.s32 1, %s521_s11 }
   0x8   : > { %p28_p0 = scmp.ge.s32.totalorder %s27_s17, 2  ;;  %p72_p1 = scmp.ne.s32.totalorder %s521_s11, %s517_s10 }
   0x9   : > { %p73_p2 = scmp.eq.s32.totalorder %s533_s14, 0  ;;  %p78_p3 = scmp.ne.s32.totalorder %s517_s10, %s513_s9 }
   0xa   : > { %s713_s17 = smov (%p28_p0, %s27_s17), 0  ;;  %p79_p5 = scmp.eq.s32.totalorder %s332_s15, 0 }
   0xb   : > { %p597_p4 = por %p73_p2, %p72_p1  ;;  %s61_s20 = ssub.s32 %s529_s13, %s713_s17 }
   0xc   : > { %p104_p6 = scmp.eq.s32.totalorder %s332_s15, 1  ;;  %p63_p7 = scmp.eq.s32.totalorder %s61_s20, 0 }
   0xd   : > { %p603_p8 = por %p79_p5, %p78_p3  ;;  %p110_p10 = scmp.eq.s32.totalorder %s333_s16, 1 }
   0xe   : > { %p607_p9 = por %p104_p6, %p72_p1  ;;  %p366_p13 = scmp.lt.s32.totalorder %s533_s14, 2 }
   0xf   : > { %s612_s23 = scalar_select %p63_p7, %s521_s11, %s65_s18  }
  0x10   : > { %p614_p11 = por %p110_p10, %p78_p3  ;;  %s137_s25 = sand.u32 1, %s521_s11  }
  0x11   : > { %s337_s26 = sshll.u32 %s137_s25, 3  ;;  %s338_s27 = sshll.u32 %s529_s13, 7 }
  0x12   : > { %s703_s24 = scalar_select %p614_p11, 1, 0 }
  0x13   : > { %s148_s30 = scalar_lea.hbm %s698_s1, %s338_s27  ;;  %s141_s3 = scalar_lea.vmem [#allocation2], %s337_s26 }
  0x14   : > { %s150_s4 = sshll.u32 %s141_s3, 4  ;;  %p627_p0 = pnand %p366_p13, %p597_p4  ;;  %s151_s4 = int_to_ptr.vmem [resolvable:$true] %s150_s4 }
  0x15   : > { %p339_p1 = scmp.ge.s32.totalorder %s533_s14, 1  ;;  %p155_p2 = scmp.lt.s32.totalorder %s533_s14, 3 }
  0x16   : > { %s138_s6 = scalar_lea.sflag [#allocation3], %s137_s25  ;;  %p427_p3 = pneg %p627_p0 }
  0x17   : > { %s438_s7 = scalar_lea.vmem %s151_s4, 128  ;;  %s535_s8 = smov [#allocation2]  }
  0x18   : > { %p439_p5 = scmp.ne.s32.totalorder %s151_s4, %s438_s7  ;;  %s443_s15 = sshll.u32 %s535_s8, 4  ;;  %s444_s15 = int_to_ptr.vmem [resolvable:$false] %s443_s15 }
  0x19   : > { %s445_s16 = scalar_lea.vmem %s444_s15, 256  ;;  %p446_p10 = scmp.lt.s32.totalorder %s151_s4, %s444_s15 }
  0x1a   : > { %p441_p6 = pnand %p439_p5, %p427_p3  ;;  %p447_p12 = scmp.lt.s32.totalorder %s445_s16, %s438_s7 }
  0x1c   : > { %p442_p7 = pneg %p441_p6  ;;  %p448_p4 = por %p447_p12, %p446_p10 }
  0x1e   : > { %p449_p13 = pnand %p448_p4, %p442_p7 }
  0x20   : > { %452 = shalt.err (!%p449_p13)
}
  0x21   : > { %361 = dma.hbm_to_vmem [thread:$0]  (!%p627_p0), %s148_s30, 128, %s151_s4, %s138_s6  }
  0x22   : > { %p156_p11 = pnand %p339_p1, %p155_p2 }
  0x23   : > { %s642_s18 = sand.u32 (!%p156_p11), 1, %s517_s10  }
  0x24   : > { %159 = sbr.rel (%p156_p11) target bundleno = 198 (0xc6), region = 28  ;;  %s340_s19 = sshll.u32 (!%p156_p11), %s642_s18, 3 }
  0x25   : > { %s162_s20 = scalar_lea.sflag (!%p156_p11), [#allocation3], %s642_s18  ;;  %s165_s25 = scalar_lea.vmem (!%p156_p11), [#allocation2], %s340_s19 }
  0x29   : > { %504 = dma.done.wait (%p603_p8), %s162_s20, 128  }
  0x2a   : > { %506 = vsyncadd (%p603_p8), %s162_s20, 4294967168  ;;  %v536_v0 = vmov 0   ;;  %v537_v1 = vmov 3   ;;  %v194_v2 = vld [vmem:[%s697_s0] sm:$0xff]  ;;  %v538_v3 = vmov 2   ;;  %v539_v4 = vmov 1  }
  0x2b   : > { %420 = vset.pattern.permute.xlu0 %v536_v0  ;;  %422 = vset.pattern.permute.xlu1 %v537_v1  ;;  %v195_v5 = vld [vmem:[%s165_s25] sm:$0xff]  ;;  %s343_s21 = sshll.u32 %s525_s12, 7  ;;  %s189_s28 = scalar_lea.vmem [#allocation5], %s340_s19 }
  0x2c   : > { %198 = vperm.xlu0 %420, %v194_v2   ;;  %209 = vperm.xlu1 %422, %v194_v2   ;;  %s235_s29 = sshll.u32 %s189_s28, 4  ;;  %s233_s4 = scalar_lea.hbm %s699_s2, %s343_s21  ;;  %s236_s29 = int_to_ptr.vmem [resolvable:$true] %s235_s29 }
  0x2d   : > { %s220_s5 = scalar_lea.sflag [#allocation4], %s642_s18  ;;  %s453_s6 = scalar_lea.vmem %s236_s29, 128 }
  0x2e   : > { %p454_p8 = scmp.ne.s32.totalorder %s236_s29, %s453_s6  ;;  %s540_s7 = smov [#allocation5]  }
  0x2f   : > { %s457_s8 = sshll.u32 %s540_s7, 4  ;;  %s458_s8 = int_to_ptr.vmem [resolvable:$false] %s457_s8 }
  0x30   : > { %421 = vset.pattern.permute.xlu0 %v538_v3  ;;  %423 = vset.pattern.permute.xlu1 %v539_v4  ;;  %p455_p11 = pnand %p454_p8, %p607_p9  ;;  %s459_s12 = scalar_lea.vmem %s458_s8, 256 }
  0x31   : > { %204 = vperm.xlu0 %421, %v194_v2   ;;  %214 = vperm.xlu1 %423, %v194_v2   ;;  %p460_p0 = scmp.lt.s32.totalorder %s236_s29, %s458_s8  ;;  %p461_p1 = scmp.lt.s32.totalorder %s459_s12, %s453_s6 }
  0x32   : > { %p456_p12 = pneg %p455_p11 }
  0x33   : > { %p462_p2 = por %p461_p1, %p460_p0 }
  0x35   : > { %424 = vset.pattern.permute.xlu0 %v539_v4  ;;  %p463_p3 = pnand %p462_p2, %p456_p12 }
  0xa7   : > { %v199_v6 = vpop.permute.xlu0 %198  ;;  %v210_v11 = vpop.permute.xlu1 %209 }
  0xa8   : > { %v201_v7 = vmul.f32 %v199_v6, %v195_v5 }
  0xaa   : > { %v348_v8 = vcvt.f32.s32 %v201_v7  ;;  %v346_v10 = vand.u32 2147483647, %v201_v7  ;;  %v351_v13 = vand.u32 2147483648, %v201_v7 }
  0xac   : > { %v349_v9 = vcvt.s32.f32 %v348_v8  ;;  %v205_v15 = vpop.permute.xlu0 %204  ;;  %vm347_vm0 = vcmp.lt.f32.partialorder %v346_v10, 8388608.0  ;;  %v215_v18 = vpop.permute.xlu1 %214 }
  0xae   : > { %v350_v12 = vand.u32 2147483647, %v349_v9 }
  0xb0   : > { %v352_v14 = vor.u32 %v351_v13, %v350_v12 }
  0xb2   : > { %v353_v16 = vsel %vm347_vm0, %v352_v14, %v201_v7 }
  0xb3   : > { %v207_v17 = vmax.f32 %v205_v15, %v353_v16 }
  0xb5   : > { %v212_v19 = vmin.f32 %v210_v11, %v207_v17 }
  0xb7   : > { %v217_v20 = vmul.f32 %v215_v18, %v212_v19 }
  0xb9   : > { %218 = vst [vmem:[%s189_s28] sm:$0xff] %v217_v20 }
  0xba   : > { %466 = shalt.err (!%p463_p3)
}
  0xbb   : > { %s467_s15 = scalar_lea.hbm %s233_s4, 128  ;;  %s471_s19 = scalar_lea.hbm %s699_s2, 256 }
  0xbc   : > { %p468_p5 = scmp.ne.s32.totalorder %s233_s4, %s467_s15  ;;  %p472_p10 = scmp.lt.s32.totalorder %s233_s4, %s699_s2 }
  0xbd   : > { %p473_p4 = scmp.lt.s32.totalorder %s471_s19, %s467_s15 }
  0xbe   : > { %p469_p6 = pnand %p468_p5, %p607_p9 }
  0xbf   : > { %p474_p13 = por %p473_p4, %p472_p10 }
  0xc0   : > { %p470_p7 = pneg %p469_p6 }
  0xc2   : > { %p475_p8 = pnand %p474_p13, %p470_p7 }
  0xc4   : > { %478 = shalt.err (!%p475_p8)
}
  0xc5   : > { %356 = dma.vmem_to_hbm [thread:$0]  (%p607_p9), %s236_s29, 128, %s233_s4, %s220_s5  }
  0xc6 PF: > { %s247_s26 = sand.u32 1, %s513_s9   ;;  %p705_p11 = scmp.ne.s32.totalorder %s703_s24, 0 }
  0xc7   : > { %p706_p12 = scmp.ge.s32.totalorder %s533_s14, 2  ;;  %s248_s27 = scalar_lea.sflag [#allocation4], %s247_s26 }
  0xc9   : > { %p363_p0 = pnand %p706_p12, %p705_p11 }
  0xcb   : > { %p364_p1 = pneg %p363_p0 }
  0xcd   : > { %508 = dma.done.wait (%p364_p1), %s248_s27, 128  }
  0xce   : > { %510 = vsyncadd (%p364_p1), %s248_s27, 4294967168  ;;  %s18_s14 = sadd.s32 1, %s533_s14   ;;  %s707_s9 = smov %s517_s10 }
  0xcf   : > { %p15_p2 = scmp.ge.s32.totalorder %s18_s14, 4   ;;  %s708_s10 = smov %s521_s11 }
  0xd0   : > { %s709_s11 = smov %s612_s23  ;;  %s710_s12 = smov %s529_s13 }
  0xd1   : > { %s711_s13 = smov %s713_s17  ;;  %17 = sbr.rel (!%p15_p2) target bundleno = 6 (0x6), region = 76 }
  0xd6   :  { %253 = vsyncpa [#allocation3], 1 }
  0xd7   :  { %255 = vsyncpa [#allocation3 + $0x1], 1 }
  0xd8   :  { %256 = vsyncpa [#allocation4], 1 }
  0xd9   :  { %258 = vsyncpa [#allocation4 + $0x1], 1 }

</bundles_post_ra>
